<compile_context>
chip_gen: v6e
topology: v6e:2x2x1
jax: 0.10.0
libtpu: 0.0.40
codegen_flags: <defaults>
</compile_context>

<pallas_src>
import functools

import jax
import jax.numpy as jnp
from jax.experimental import pallas as pl
from jax.experimental.pallas import tpu as pltpu


def _round_up(a: int, m: int) -> int:
    return (a + m - 1) // m * m


def _cdiv(a: int, m: int) -> int:
    return (a + m - 1) // m


def _vmem_cap_bytes() -> int:
    """Physical VMEM per TensorCore (v5e/v6e: 128 MiB, v7x: 64 MiB)."""
    try:
        return int(pltpu.get_tpu_info().vmem_capacity_bytes)
    except Exception:  # noqa: BLE001 - conservative fallback if query unsupported
        return 64 << 20


def _linear_kernel_ws(x_ref, w_ref, b_ref, o_ref):
    """Weight-stationary: full-K dot in one MXU pass, bias fused into the store.

    x_ref: (tm, Kp) f32   w_ref: (Kp, tn) compute dtype (bf16 or f32)
    b_ref: (1,  tn) f32   o_ref: (tm, tn) f32
    """
    x = x_ref[...].astype(w_ref.dtype)  # in-kernel cast: free VPU work under MXU
    o_ref[...] = (
        jnp.dot(x, w_ref[...], preferred_element_type=jnp.float32) + b_ref[...]
    ).astype(o_ref.dtype)


def _linear_kernel_ktiled(x_ref, w_ref, b_ref, o_ref):
    """Fallback for very large D: K-tiled reduction, accumulating into o_ref."""
    k = pl.program_id(2)

    @pl.when(k == 0)
    def _():
        o_ref[...] = jnp.zeros_like(o_ref)

    x = x_ref[...].astype(w_ref.dtype)
    o_ref[...] += jnp.dot(x, w_ref[...], preferred_element_type=jnp.float32)

    @pl.when(k == pl.num_programs(2) - 1)
    def _():
        o_ref[...] += b_ref[...]


def prepare_linear_params(weight, bias, *, compute_dtype=jnp.bfloat16):
    """One-time parameter prep (call at setup, NOT per forward pass).

    weight: [H, D] float32 (torch.nn.Linear layout), bias: [H] float32.
    Returns:
      w_p: [Kp, Np] compute_dtype  (transposed, zero-padded to 128 multiples)
      b_p: [1,  Np] float32        (zero-padded)
    """
    H, D = weight.shape
    Kp = _round_up(D, 128)
    Np = _round_up(H, 128)
    w_t = jnp.asarray(weight).T  # [D, H], transposed once at setup
    w_p = jnp.pad(w_t, ((0, Kp - D), (0, Np - H))).astype(compute_dtype)
    b_p = jnp.pad(jnp.asarray(bias, jnp.float32), (0, Np - H)).reshape(1, Np)
    return w_p, b_p


@functools.partial(jax.jit, static_argnames=("hidden_size", "tm", "tn"))
def linear_encoder_forward(x, w_p, b_p, *, hidden_size, tm=256, tn=None):
    """y = x @ W^T + b with prepared params.

    x:   [B, D] float32
    w_p: [Kp, Np] (from prepare_linear_params)
    b_p: [1, Np] float32
    returns [B, hidden_size] float32
    """
    B, D = x.shape
    Kp, Np = w_p.shape
    if Kp < D or Np < hidden_size:
        raise ValueError("prepared params are inconsistent with x / hidden_size")

    elt_w = jnp.dtype(w_p.dtype).itemsize

    # K is the reduction axis: pad x with zeros only when D is not Kp-aligned
    # (padding M is NOT needed - the grid uses cdiv and Pallas masks edge rows).
    if Kp != D:
        x = jnp.pad(x, ((0, 0), (0, Kp - D)))

    # ---- Tile selection ----------------------------------------------------
    # Lane-dense N tile; 256 feeds full MXU columns on v6e/v7x when Np allows.
    if tn is None:
        tn_eff = 256 if Np % 256 == 0 else 128
    else:
        tn_eff = min(tn, Np)
    if Np % tn_eff != 0:
        tn_eff = 128
    grid_n = Np // tn_eff

    # Sublane-aligned batch tile; try to expose >= 2 parallel grid steps so
    # v7x's second TensorCore gets work (no effect on 1-TC v5e/v6e).
    tm_eff = min(tm, _round_up(B, 8))
    if grid_n * _cdiv(B, tm_eff) < 2 and B > 8:
        tm_eff = _round_up(_cdiv(B, 2), 8)
    grid_m = _cdiv(B, tm_eff)  # batch remainder handled by Pallas edge masking

    vmem_cap = _vmem_cap_bytes()

    # Conservative per-step VMEM footprint of the weight-stationary plan
    # (x/out double-buffered by the pipeline; weight/bias counted twice).
    ws_bytes = (
        2 * tm_eff * Kp * 4        # x tiles (f32 in HBM)
        + 2 * Kp * tn_eff * elt_w  # resident weight column block
        + 2 * tm_eff * tn_eff * 4  # output tiles
        + 2 * tn_eff * 4           # bias
    )
    weight_stationary = ws_bytes <= int(0.5 * vmem_cap)

    if weight_stationary:
        # grid = (N tiles, M tiles), M innermost: weight DMA'd once per N tile
        # and reused across every batch tile.
        grid = (grid_n, grid_m)
        in_specs = [
            pl.BlockSpec((tm_eff, Kp), lambda n, m: (m, 0)),
            pl.BlockSpec((Kp, tn_eff), lambda n, m: (0, n)),  # m-independent
            pl.BlockSpec((1, tn_eff), lambda n, m: (0, n)),
        ]
        out_spec = pl.BlockSpec((tm_eff, tn_eff), lambda n, m: (m, n))
        kernel = _linear_kernel_ws
        semantics = ("parallel", "parallel")
        tile_bytes = ws_bytes
        bytes_accessed = (
            4 * B * Kp * grid_n + elt_w * Kp * Np + 4 * B * Np + 4 * Np
        )
    else:
        # Very large D: tile K (last grid axis) and accumulate directly into
        # the resident f32 output block - still no accumulator scratch.
        tk_eff = next(t for t in (2048, 1024, 512, 256, 128) if Kp % t == 0)
        grid_k = Kp // tk_eff
        grid = (grid_n, grid_m, grid_k)
        depth = 3  # hide DMA issue latency on v6e/v7x; cheap in VMEM
        in_specs = [
            pl.BlockSpec((tm_eff, tk_eff), lambda n, m, k: (m, k),
                         pipeline_mode=pl.Buffered(depth)),
            pl.BlockSpec((tk_eff, tn_eff), lambda n, m, k: (k, n),
                         pipeline_mode=pl.Buffered(depth)),
            pl.BlockSpec((1, tn_eff), lambda n, m, k: (0, n)),
        ]
        out_spec = pl.BlockSpec((tm_eff, tn_eff), lambda n, m, k: (m, n))
        kernel = _linear_kernel_ktiled
        semantics = ("parallel", "parallel", "arbitrary")
        tile_bytes = (
            depth * tm_eff * tk_eff * 4
            + depth * tk_eff * tn_eff * elt_w
            + 2 * tm_eff * tn_eff * 4
            + 2 * tn_eff * 4
        )
        bytes_accessed = (
            4 * B * Kp * grid_n + elt_w * Kp * Np * grid_m + 4 * B * Np + 4 * Np
        )

    # Generation-aware VMEM budget: >= scoped defaults, <= ~70% of physical
    # (v5e/v6e 128 MiB -> ~89 MiB, v7x 64 MiB -> ~44 MiB).
    vmem_limit = int(min(max(2 * tile_bytes, 32 << 20), int(0.7 * vmem_cap)))

    cost = pl.CostEstimate(
        flops=2 * B * Kp * Np,
        transcendentals=0,
        bytes_accessed=int(bytes_accessed),
    )

    out = pl.pallas_call(
        kernel,
        out_shape=jax.ShapeDtypeStruct((B, Np), jnp.float32),
        grid_spec=pltpu.PrefetchScalarGridSpec(
            num_scalar_prefetch=0,
            grid=grid,
            in_specs=in_specs,
            out_specs=out_spec,
        ),
        compiler_params=pltpu.CompilerParams(
            dimension_semantics=semantics,
            vmem_limit_bytes=vmem_limit,
        ),
        cost_estimate=cost,
    )(x, w_p, b_p)

    # Lane padding of H is sliced off; batch rows were never padded.
    return out if Np == hidden_size else out[:, :hidden_size]


if __name__ == "__main__":
    # Small shapes consistent with the module: 16x16 RGB images, hidden_size=32.
    image_height, image_width, hidden_size = 16, 16, 32
    batch = 2
    D = image_height * image_width * 3  # 768

    key = jax.random.PRNGKey(0)
    kx, kw, kb = jax.random.split(key, 3)

    # torch.nn.Linear-style params: weight [H, D], bias [H], uniform(+-1/sqrt(D)).
    bound = 1.0 / jnp.sqrt(jnp.float32(D))
    weight = jax.random.uniform(kw, (hidden_size, D), jnp.float32, -bound, bound)
    bias = jax.random.uniform(kb, (hidden_size,), jnp.float32, -bound, bound)
    x = jax.random.normal(kx, (batch, D), jnp.float32)

    ref = x @ weight.T + bias[None, :]

    # Default fast path: bf16 MXU operands, f32 accumulation (looser tolerance).
    w_bf16, b_p = prepare_linear_params(weight, bias)  # one-time setup
    out = linear_encoder_forward(x, w_bf16, b_p, hidden_size=hidden_size)
    out = jax.block_until_ready(out)
    assert out.shape == (batch, hidden_size)
    assert out.dtype == jnp.float32
    assert jnp.allclose(out, ref, atol=5e-2, rtol=5e-2), float(
        jnp.max(jnp.abs(out - ref))
    )

    # Exact path: f32 MXU operands for a tight correctness check.
    w_f32, b_p32 = prepare_linear_params(weight, bias, compute_dtype=jnp.float32)
    out32 = linear_encoder_forward(x, w_f32, b_p32, hidden_size=hidden_size)
    out32 = jax.block_until_ready(out32)
    assert jnp.allclose(out32, ref, atol=1e-5, rtol=1e-5), float(
        jnp.max(jnp.abs(out32 - ref))
    )

    print("KERNEL_OK")
</pallas_src>

<mosaic_0001>
module attributes {stable_mosaic.version = 11 : i64} {
  func.func @_linear_kernel_ws(%arg0: i32, %arg1: i32, %arg2: memref<8x768xf32, #tpu.memory_space<vmem>>, %arg3: memref<768x128xbf16, #tpu.memory_space<vmem>>, %arg4: memref<1x128xf32, #tpu.memory_space<vmem>>, %arg5: memref<8x128xf32, #tpu.memory_space<vmem>>) attributes {dimension_semantics = [#tpu.dimension_semantics<parallel>, #tpu.dimension_semantics<parallel>], iteration_bounds = array<i64: 1, 1>, scalar_prefetch = 0 : i64, scratch_operands = 0 : i64, tpu.core_type = #tpu.core_type<tc>, window_params = [{transform_indices = @transform_0, window_bounds = array<i64: 8, 768>}, {transform_indices = @transform_1, window_bounds = array<i64: 768, 128>}, {transform_indices = @transform_2, window_bounds = array<i64: 1, 128>}, {transform_indices = @transform_3, window_bounds = array<i64: 8, 128>}]} {
    %c0 = arith.constant 0 : index
    %c0_0 = arith.constant 0 : index
    %0 = vector.load %arg2[%c0, %c0_0] : memref<8x768xf32, #tpu.memory_space<vmem>>, vector<8x768xf32>
    %1 = arith.truncf %0 : vector<8x768xf32> to vector<8x768xbf16>
    %c0_1 = arith.constant 0 : index
    %c0_2 = arith.constant 0 : index
    %2 = vector.load %arg3[%c0_1, %c0_2] : memref<768x128xbf16, #tpu.memory_space<vmem>>, vector<768x128xbf16>
    %cst = arith.constant dense<0.000000e+00> : vector<8x128xf32>
    %3 = tpu.matmul %1, %2, %cst {dimension_numbers = #tpu.dot_dimension_numbers<[1], [0], [0], [1], [0, 0, 1, 1], [], []>} : vector<8x768xbf16>, vector<768x128xbf16>, vector<8x128xf32> -> vector<8x128xf32>
    %c0_3 = arith.constant 0 : index
    %c0_4 = arith.constant 0 : index
    %4 = vector.load %arg4[%c0_3, %c0_4] : memref<1x128xf32, #tpu.memory_space<vmem>>, vector<1x128xf32>
    %5 = vector.broadcast %4 : vector<1x128xf32> to vector<8x128xf32>
    %6 = arith.addf %3, %5 : vector<8x128xf32>
    %c0_5 = arith.constant 0 : index
    %c0_6 = arith.constant 0 : index
    %7 = vector.load %arg5[%c0_5, %c0_6] : memref<8x128xf32, #tpu.memory_space<vmem>>, vector<8x128xf32>
    tpu.vector_store %arg5[%c0_5, %c0_6], %6 {strides = array<i32>} : memref<8x128xf32, #tpu.memory_space<vmem>>, vector<8x128xf32>,
    return
  }
  func.func @transform_0(%arg0: i32, %arg1: i32) -> (i32, i32) {
    %c0_i32 = arith.constant 0 : i32
    %c0_i32_0 = arith.constant 0 : i32
    return %arg1, %c0_i32 : i32, i32
  }
  func.func @transform_1(%arg0: i32, %arg1: i32) -> (i32, i32) {
    %c0_i32 = arith.constant 0 : i32
    %c0_i32_0 = arith.constant 0 : i32
    return %c0_i32, %arg0 : i32, i32
  }
  func.func @transform_2(%arg0: i32, %arg1: i32) -> (i32, i32) {
    %c0_i32 = arith.constant 0 : i32
    %c0_i32_0 = arith.constant 0 : i32
    return %c0_i32, %arg0 : i32, i32
  }
  func.func @transform_3(%arg0: i32, %arg1: i32) -> (i32, i32) {
    %c0_i32 = arith.constant 0 : i32
    return %arg1, %arg0 : i32, i32
  }
}

</mosaic_0001>

<bundles_post_ra>
// kernel: linear_encoder_forward.1
= control target key start
LH: loop header
LB: loop body
LE: loop exit
PB: predicated region body
PF: predicated region fallthrough
CT: control target
= control target key end

     0   :  { %8 = vsyncpa [#allocation3], 0  ;;  %s945_s0 = inlined_call_operand.hbm [shape: f32[2,768], index: 0, kind: input, shape index: {}]   ;;  %s946_s1 = inlined_call_operand.hbm [shape: bf16[768,128], index: 1, kind: input, shape index: {}]   ;;  %s947_s2 = inlined_call_operand.vmem [shape: f32[1,128], index: 2, kind: input, shape index: {}]   ;;  %s948_s3 = inlined_call_operand.hbm [shape: f32[2,128], index: 3, kind: output, shape index: {}]  }
   0x1   :  { %9 = vsyncpa [#allocation6], 0 }
   0x2   :  { %10 = vsyncpa [#allocation4], 0 }
   0x3   :  { %15 = vsyncadd [#allocation3], 576  ;;  %s903_s12 = smov [#allocation2]  }
   0x4   :  { %s16_s13 = sshll.u32 %s903_s12, 4  ;;  %s17_s13 = int_to_ptr.vmem [resolvable:$true] %s16_s13 }
   0x5   :  { %s845_s14 = scalar_lea.vmem %s17_s13, 192  ;;  %s849_s15 = scalar_lea.vmem %s17_s13, 768 }
   0x6   :  { %p846_p0 = scmp.ne.s32.totalorder %s17_s13, %s845_s14  ;;  %p850_p1 = scmp.lt.s32.totalorder %s17_s13, %s17_s13 }
   0x7   :  { %p851_p2 = scmp.lt.s32.totalorder %s849_s15, %s845_s14 }
   0x9   :  { %p852_p3 = por %p851_p2, %p850_p1 }
   0xb   :  { %p853_p4 = pnand %p852_p3, %p846_p0 }
   0xd   :  { %856 = shalt.err (!%p853_p4)
}
   0xe   :  { %s904_s16 = smov 192   ;;  %s905_s17 = smov 12  }
   0xf   :  { %22 = dma.hbm_to_vmem [thread:$0]  %s945_s0, 192, %s17_s13, [#allocation3], %s904_s16, %s904_s16, %s905_s17  }
  0x10   :  { %s906_s20 = smov [#allocation5]  }
  0x11   :  { %s28_s21 = sshll.u32 %s906_s20, 4  ;;  %s29_s21 = int_to_ptr.vmem [resolvable:$true] %s28_s21 }
  0x12   :  { %s865_s22 = scalar_lea.vmem %s29_s21, 6144  ;;  %p870_p6 = scmp.lt.s32.totalorder %s29_s21, %s29_s21 }
  0x13   :  { %p866_p5 = scmp.ne.s32.totalorder %s29_s21, %s865_s22  ;;  %p871_p7 = scmp.lt.s32.totalorder %s865_s22, %s865_s22 }
  0x15   :  { %p872_p8 = por %p871_p7, %p870_p6 }
  0x17   :  { %p873_p9 = pnand %p872_p8, %p866_p5 }
  0x19   :  { %876 = shalt.err (!%p873_p9)
}
  0x1a   :  { %s907_s23 = smov 64   ;;  %s908_s24 = smov 4  }
  0x1b   :  { %34 = dma.hbm_to_vmem [thread:$0]  %s946_s1, 6144, %s29_s21, [#allocation6], %s907_s23, %s907_s23, %s908_s24  }
  0x1c   :  { %897 = dma.done.wait [#allocation3], 768  }
  0x1d   :  { %898 = vsyncadd [#allocation3], 4294966528 }
  0x1e   :  { %899 = dma.done.wait [#allocation6], 6144  }
  0x1f   :  { %900 = vsyncadd [#allocation6], 4294961152  ;;  %v781_v0 = vld [vmem:[#allocation5 + $0x78] sm:$0xff]   ;;  %v785_v4 = vld [vmem:[#allocation5 + $0x70] sm:$0xff]   ;;  %v909_v23 = vmov 1983009808   ;;  %v67_v25 = vlaneseq }
  0x20   :  { %v782_v1 = vld [vmem:[#allocation5 + $0x38] sm:$0xff]   ;;  %705 = vmatprep.subr.bf16.mxu0 %v781_v0  ;;  %v786_v5 = vld [vmem:[#allocation5 + $0x30] sm:$0xff]   ;;  %v789_v8 = vld [vmem:[#allocation5 + $0x68] sm:$0xff]   ;;  %v65_v24 = vunpack.c.l.s4 %v909_v23 }
  0x21   :  { %v783_v2 = vld [vmem:[#allocation5 + $0xf8] sm:$0xff]   ;;  %706 = vmatpush3.bf16.msra.mxu0 %v782_v1  ;;  %v787_v6 = vld [vmem:[#allocation5 + $0xf0] sm:$0xff]   ;;  %v790_v9 = vld [vmem:[#allocation5 + $0x28] sm:$0xff]   ;;  %v68_v31 = vshrl.u32 %v67_v25, 7 }
  0x22   :  { %v784_v3 = vld [vmem:[#allocation5 + $0xb8] sm:$0xff]   ;;  %727 = vmatprep.subr.bf16.mxu1 %v783_v2  ;;  %707 = vmatprep.subr.bf16.mxu0 %v785_v4  ;;  %v788_v7 = vld [vmem:[#allocation5 + $0xb0] sm:$0xff]   ;;  %v791_v10 = vld [vmem:[#allocation5 + $0xe8] sm:$0xff]   ;;  %v66_v30 = vunpack.c.0.s8 %v65_v24 }
  0x23   :  { %728 = vmatpush3.bf16.msra.mxu1 %v784_v3  ;;  %v792_v11 = vld [vmem:[#allocation5 + $0xa8] sm:$0xff]   ;;  %v793_v12 = vld [vmem:[#allocation5 + $0x60] sm:$0xff]   ;;  %v797_v16 = vld [vmem:[#allocation5 + $0x58] sm:$0xff]  }
  0x24   :  { %729 = vmatprep.subr.bf16.mxu1 %v787_v6  ;;  %v794_v13 = vld [vmem:[#allocation5 + $0x20] sm:$0xff]   ;;  %v798_v17 = vld [vmem:[#allocation5 + $0x18] sm:$0xff]   ;;  %v801_v20 = vld [vmem:[#allocation5 + $0x50] sm:$0xff]   ;;  %v69_v36 = vsub.s32 %v66_v30, %v68_v31 }
  0x25   :  { %708 = vmatpush3.bf16.msra.mxu0 %v786_v5  ;;  %v795_v14 = vld [vmem:[#allocation5 + $0xe0] sm:$0xff]   ;;  %v799_v18 = vld [vmem:[#allocation5 + $0xd8] sm:$0xff]   ;;  %v802_v21 = vld [vmem:[#allocation5 + $0x10] sm:$0xff]  }
  0x26   :  { %709 = vmatprep.subr.bf16.mxu0 %v789_v8  ;;  %v796_v15 = vld [vmem:[#allocation5 + $0xa0] sm:$0xff]   ;;  %v800_v19 = vld [vmem:[#allocation5 + $0x98] sm:$0xff]   ;;  %v803_v22 = vld [vmem:[#allocation5 + $0xd0] sm:$0xff]  }
  0x27   :  { %730 = vmatpush3.bf16.msra.mxu1 %v788_v7  ;;  %v804_v26 = vld [vmem:[#allocation5 + $0x90] sm:$0xff]   ;;  %v805_v27 = vld [vmem:[#allocation5 + $0x48] sm:$0xff]   ;;  %v809_v33 = vld [vmem:[#allocation5 + $0x40] sm:$0xff]  }
  0x28   :  { %731 = vmatprep.subr.bf16.mxu1 %v791_v10  ;;  %v806_v28 = vld [vmem:[#allocation5 + $0x8] sm:$0xff]   ;;  %v810_v34 = vld [vmem:[#allocation5] sm:$0xff]   ;;  %v812_v37 = vld [vmem:[#allocation2] ss:$12 sps:$4 sm:$0xff]  }
  0x29   :  { %710 = vmatpush3.bf16.msra.mxu0 %v790_v9  ;;  %v807_v29 = vld [vmem:[#allocation5 + $0xc8] sm:$0xff]   ;;  %v811_v35 = vld [vmem:[#allocation5 + $0xc0] sm:$0xff]   ;;  %v70_v40 = vrot.slane %v812_v37, %v69_v36  ;;  %v817_v42 = vld [vmem:[#allocation5 + $0x178] sm:$0xff]  }
  0x2a   :  { %711 = vmatprep.subr.bf16.mxu0 %v793_v12  ;;  %v808_v32 = vld [vmem:[#allocation5 + $0x88] sm:$0xff]   ;;  %v816_v39 = vld [vmem:[#allocation5 + $0x80] sm:$0xff]   ;;  %v820_v51 = vld [vmem:[#allocation5 + $0x138] sm:$0xff]  }
  0x2b   :  { %732 = vmatpush3.bf16.msra.mxu1 %v792_v11  ;;  %v814_v38 = vld [vmem:[#allocation2 + $0x18] ss:$12 sps:$4 sm:$0xff]   ;;  %v819_v44 = vld [vmem:[#allocation2 + $0x1c] ss:$12 sps:$4 sm:$0xff]   ;;  %v825_v60 = vld [vmem:[#allocation5 + $0x160] sm:$0xff]  }
  0x2c   :  { %733 = vmatprep.subr.bf16.mxu1 %v795_v14  ;;  %v84_v41 = vrot.slane %v814_v38, %v69_v36  ;;  %v818_v43 = vld [vmem:[#allocation2 + $0x4] ss:$12 sps:$4 sm:$0xff]   ;;  %v91_v48 = vrot.slane %v819_v44, %v69_v36  ;;  %v823_v58 = vld [vmem:[#allocation5 + $0x168] sm:$0xff]   ;;  %v827_v62 = vld [vmem:[#allocation5 + $0x158] sm:$0xff]  }
  0x2d   :  { %712 = vmatpush3.bf16.msra.mxu0 %v794_v13  ;;  %v77_v47 = vrot.slane %v818_v43, %v69_v36  ;;  %v821_v54 = vld [vmem:[#allocation5 + $0x170] sm:$0xff]   ;;  %v824_v59 = vld [vmem:[#allocation5 + $0x128] sm:$0xff]   ;;  %v826_v61 = vld [vmem:[#allocation5 + $0x120] sm:$0xff]  }
  0x2e   :  { %713 = vmatprep.subr.bf16.mxu0 %v797_v16  ;;  %v93_v45 = vcombine.high %v70_v40, %v84_v41  ;;  %v92_v46 = vcombine.low %v70_v40, %v84_v41  ;;  %v822_v57 = vld [vmem:[#allocation5 + $0x130] sm:$0xff]   ;;  %v835_v63 = vld [vmem:[#allocation2 + $0x8] ss:$12 sps:$4 sm:$0xff]   ;;  %v831_v8 = vld [vmem:[#allocation5 + $0x148] sm:$0xff]  }
  0x2f   :  { %734 = vmatpush3.bf16.msra.mxu1 %v796_v15  ;;  %v95_v52 = vcombine.high %v77_v47, %v91_v48  ;;  %v94_v53 = vcombine.low %v77_v47, %v91_v48  ;;  %v836_v0 = vld [vmem:[#allocation2 + $0x20] ss:$12 sps:$4 sm:$0xff]   ;;  %v104_v2 = vrot.slane %v835_v63, %v69_v36  ;;  %v832_v9 = vld [vmem:[#allocation5 + $0x108] sm:$0xff]   ;;  %v833_v10 = vld [vmem:[#allocation5 + $0x140] sm:$0xff]  }
  0x30   :  { %735 = vmatprep.subr.bf16.mxu1 %v799_v18  ;;  %v121_v49 = vpack.c.bf16 %v93_v45, %v93_v45  ;;  %v120_v50 = vpack.c.bf16 %v92_v46, %v92_v46  ;;  %v828_v1 = vld [vmem:[#allocation5 + $0x118] sm:$0xff]   ;;  %v111_v3 = vrot.slane %v836_v0, %v69_v36  ;;  %v829_v4 = vld [vmem:[#allocation5 + $0x150] sm:$0xff]   ;;  %v834_v12 = vld [vmem:[#allocation5 + $0x100] sm:$0xff]  }
  0x31   :  { %714 = vmatpush3.bf16.msra.mxu0 %v798_v17  ;;  %v123_v55 = vpack.c.bf16 %v95_v52, %v95_v52  ;;  %v122_v56 = vpack.c.bf16 %v94_v53, %v94_v53  ;;  %v830_v6 = vld [vmem:[#allocation5 + $0x110] sm:$0xff]  }
  0x32   :  { %715 = vmatprep.subr.bf16.mxu0 %v801_v20  ;;  %549 = vmatprep.mubr.bf16.mxu0 %v121_v49  ;;  %v113_v5 = vcombine.high %v104_v2, %v111_v3  ;;  %v112_v11 = vcombine.low %v104_v2, %v111_v3  ;;  %v656_v23 = vld [vmem:[%s947_s2] ss:$0 sm:$0xff] }
  0x33   :  { %736 = vmatpush3.bf16.msra.mxu1 %v800_v19  ;;  %589 = vmatprep.mubr.bf16.mxu1 %v123_v55 }
  0x34   :  { %737 = vmatprep.subr.bf16.mxu1 %v803_v22  ;;  %v125_v7 = vpack.c.bf16 %v113_v5, %v113_v5  ;;  %v124_v13 = vpack.c.bf16 %v112_v11, %v112_v11 }
  0x35   :  { %716 = vmatpush3.bf16.msra.mxu0 %v802_v21 }
  0x36   :  { %717 = vmatprep.subr.bf16.mxu0 %v805_v27 }
  0x37   :  { %738 = vmatpush3.bf16.msra.mxu1 %v804_v26 }
  0x38   :  { %739 = vmatprep.subr.bf16.mxu1 %v807_v29 }
  0x39   :  { %718 = vmatpush3.bf16.msra.mxu0 %v806_v28 }
  0x3a   :  { %719 = vmatprep.subr.bf16.mxu0 %v809_v33 }
  0x3b   :  { %740 = vmatpush3.bf16.msra.mxu1 %v808_v32 }
  0x3c   :  { %741 = vmatprep.subr.bf16.mxu1 %v811_v35 }
  0x3d   :  { %720 = vmatpush3.bf16.msra.mxu0 %v810_v34 }
  0x3e   :  { %749 = vmatprep.subr.bf16.mxu0 %v817_v42 }
  0x3f   :  { %742 = vmatpush3.bf16.msra.mxu1 %v816_v39 }
  0x40   :  { %550 = vmatmul.mubr.bf16.vlgmr.msra.gmra.mxu0 %v120_v50 }
  0x41   :  { %750 = vmatpush3.bf16.msra.mxu0 %v820_v51  ;;  %629 = vmatprep.mubr.bf16.mxu0 %v125_v7 }
  0x42   :  { %751 = vmatprep.subr.bf16.mxu0 %v821_v54  ;;  %590 = vmatmul.mubr.bf16.vlgmr.msra.gmra.mxu1 %v122_v56 }
  0x45   :  { %752 = vmatpush3.bf16.msra.mxu0 %v822_v57 }
  0x46   :  { %753 = vmatprep.subr.bf16.mxu0 %v823_v58 }
  0x49   :  { %754 = vmatpush3.bf16.msra.mxu0 %v824_v59 }
  0x4a   :  { %755 = vmatprep.subr.bf16.mxu0 %v825_v60 }
  0x4d   :  { %756 = vmatpush3.bf16.msra.mxu0 %v826_v61 }
  0x4e   :  { %757 = vmatprep.subr.bf16.mxu0 %v827_v62 }
  0x51   :  { %758 = vmatpush3.bf16.msra.mxu0 %v828_v1 }
  0x52   :  { %759 = vmatprep.subr.bf16.mxu0 %v829_v4 }
  0x55   :  { %760 = vmatpush3.bf16.msra.mxu0 %v830_v6 }
  0x56   :  { %761 = vmatprep.subr.bf16.mxu0 %v831_v8 }
  0x59   :  { %762 = vmatpush3.bf16.msra.mxu0 %v832_v9 }
  0x5a   :  { %763 = vmatprep.subr.bf16.mxu0 %v833_v10 }
  0x5d   :  { %764 = vmatpush3.bf16.msra.mxu0 %v834_v12 }
  0x60   :  { %630 = vmatmul.mubr.bf16.vlgmr.msra.gmra.mxu0 %v124_v13 }
 0x100   :  { %v721_v14 = vpop.f32.mrf.mxu0 }
 0x102   :  { %v722_v15 = vpop.f32.mrf.mxu0  ;;  %v743_v16 = vpop.f32.mrf.mxu1 }
 0x103   :  { %v723_v22 = vadd.f32 %v722_v15, %v721_v14 }
 0x104   :  { %v724_v17 = vpop.f32.mrf.mxu0  ;;  %v744_v18 = vpop.f32.mrf.mxu1 }
 0x105   :  { %v552_v24 = vadd.f32 %v723_v22, %v656_v23  ;;  %v745_v25 = vadd.f32 %v744_v18, %v743_v16 }
 0x106   :  { %v725_v19 = vpop.f32.mrf.mxu0  ;;  %v746_v20 = vpop.f32.mrf.mxu1 }
 0x107   :  { %v592_v28 = vadd.f32 %v745_v25, %v552_v24 }
 0x108   :  { %v747_v21 = vpop.f32.mrf.mxu1 }
 0x120   :  { %v765_v26 = vpop.f32.mrf.mxu0 }
 0x122   :  { %v766_v27 = vpop.f32.mrf.mxu0 }
 0x123   :  { %v767_v29 = vadd.f32 %v766_v27, %v765_v26 }
 0x124   :  { %v768_v30 = vpop.f32.mrf.mxu0 }
 0x125   :  { %v632_v31 = vadd.f32 %v767_v29, %v592_v28 }
 0x126   :  { %v769_v32 = vpop.f32.mrf.mxu0 }
 0x127   :  { %637 = vst [vmem:[#allocation7] sm:$0xff] %v632_v31 }
 0x128   :  { %642 = vsyncadd [#allocation4], 96  ;;  %s910_s27 = smov [#allocation7]  }
 0x129   :  { %s643_s28 = sshll.u32 %s910_s27, 4  ;;  %s644_s28 = int_to_ptr.vmem [resolvable:$true] %s643_s28 }
 0x12a   :  { %s877_s29 = scalar_lea.vmem %s644_s28, 32  ;;  %s881_s30 = scalar_lea.vmem %s644_s28, 128 }
 0x12b   :  { %p878_p10 = scmp.ne.s32.totalorder %s644_s28, %s877_s29  ;;  %p882_p11 = scmp.lt.s32.totalorder %s644_s28, %s644_s28 }
 0x12c   :  { %p883_p12 = scmp.lt.s32.totalorder %s881_s30, %s877_s29 }
 0x12e   :  { %p884_p13 = por %p883_p12, %p882_p11 }
 0x130   :  { %p885_p0 = pnand %p884_p13, %p878_p10 }
 0x132   :  { %888 = shalt.err (!%p885_p0)
}
 0x133   :  { %s911_s2 = smov 32   ;;  %s912_s4 = smov 2  }
 0x134   :  { %649 = dma.vmem_to_hbm [thread:$0]  %s644_s28, 32, %s948_s3, [#allocation4], %s911_s2, %s911_s2, %s912_s4  }
 0x135   :  { %901 = dma.done.wait [#allocation4], 128  }
 0x136   :  { %902 = vsyncadd [#allocation4], 4294967168 }
 0x137   :  { %653 = vsyncpa [#allocation3], 1 }
 0x138   :  { %654 = vsyncpa [#allocation6], 1 }
 0x139   :  { %655 = vsyncpa [#allocation4], 1 }

</bundles_post_ra>
